<compile_context>
chip_gen: v6e
topology: v6e:2x2x1
jax: 0.10.0
libtpu: 0.0.40
codegen_flags: <defaults>
</compile_context>

<pallas_src>
import jax
import jax.numpy as jnp
from jax.experimental import pallas as pl
from jax.experimental.pallas import tpu as pltpu

LANE = 128


def _round_up(n, m):
    return ((n + m - 1) // m) * m


def mlp_kernel(x_ref, w1_ref, w2_ref, w3_ref, b_ref, o_ref):
    # Single VMEM-resident tile per grid step: run all three Linear(+ReLU)
    # layers back-to-back on the MXU/VPU without touching HBM in between.
    # Activations are cast to the weight dtype so every dot uses the native
    # MXU path (f32 accumulation via preferred_element_type).
    dh = w1_ref.shape[1]
    do = w3_ref.shape[1]
    cdt = w1_ref.dtype

    x = x_ref[...].astype(cdt)
    h1 = jnp.dot(x, w1_ref[...], preferred_element_type=jnp.float32)
    h1 = jnp.maximum(h1 + b_ref[0:1, :dh], 0.0)

    h2 = jnp.dot(h1.astype(cdt), w2_ref[...], preferred_element_type=jnp.float32)
    h2 = jnp.maximum(h2 + b_ref[1:2, :dh], 0.0)

    y = jnp.dot(h2.astype(cdt), w3_ref[...], preferred_element_type=jnp.float32)
    y = y + b_ref[2:3, :do]
    o_ref[...] = y.astype(o_ref.dtype)


def mlp_forward(x, params, d_out, *, block_b=None, slice_output=True):
    """Fused MLP forward.

    params = (w1, w2, w3, b_stacked) from init_params (lane-padded; weights may
    be bf16, biases stay f32).  If block_b is given and B > block_b, the batch
    is tiled over a 1-D "parallel" grid (weights stay resident across tiles).
    slice_output=False returns the 128-lane padded output (avoids the extra
    narrow-copy dispatch when the consumer can take padded lanes).
    """
    w1, w2, w3, b = params
    B, d_in = x.shape
    dh_p = w1.shape[1]
    do_p = w3.shape[1]

    flops = 2 * B * (d_in * dh_p + dh_p * dh_p + dh_p * do_p)
    bytes_accessed = int(
        x.size * x.dtype.itemsize
        + sum(a.size * a.dtype.itemsize for a in (w1, w2, w3, b))
        + B * do_p * 4
    )
    cost = pl.CostEstimate(flops=flops, transcendentals=0,
                           bytes_accessed=bytes_accessed)

    if block_b is None or B <= block_b:
        # Gridless: everything is one VMEM-resident block (launch-bound regime).
        vmem = pl.BlockSpec(memory_space=pltpu.MemorySpace.VMEM)
        out_padded = pl.pallas_call(
            mlp_kernel,
            out_shape=jax.ShapeDtypeStruct((B, do_p), jnp.float32),
            in_specs=[vmem] * 5,
            out_specs=vmem,
            cost_estimate=cost,
        )(x, w1, w2, w3, b)
    else:
        # Batch-tiled path: weights use a constant index_map so they stay
        # VMEM-resident across batch tiles; the batch axis is "parallel"
        # (megacore sharding on v7x, x/out DMA pipelined against compute).
        B_pad = _round_up(B, block_b)
        if B_pad != B:
            x = jnp.pad(x, ((0, B_pad - B), (0, 0)))
        out_padded = pl.pallas_call(
            mlp_kernel,
            out_shape=jax.ShapeDtypeStruct((B_pad, do_p), jnp.float32),
            grid=(B_pad // block_b,),
            in_specs=[
                pl.BlockSpec((block_b, d_in), lambda i: (i, 0)),
                pl.BlockSpec(w1.shape, lambda i: (0, 0)),
                pl.BlockSpec(w2.shape, lambda i: (0, 0)),
                pl.BlockSpec(w3.shape, lambda i: (0, 0)),
                pl.BlockSpec(b.shape, lambda i: (0, 0)),
            ],
            out_specs=pl.BlockSpec((block_b, do_p), lambda i: (i, 0)),
            compiler_params=pltpu.CompilerParams(
                dimension_semantics=("parallel",)),
            cost_estimate=cost,
        )(x, w1, w2, w3, b)
        if B_pad != B:
            out_padded = out_padded[:B]

    return out_padded[:, :d_out] if slice_output else out_padded


def init_params(key, d_in, d_hidden, d_out, compute_dtype=jnp.float32):
    """Init mimicking nn.Linear's U(-1/sqrt(fan_in), 1/sqrt(fan_in)).

    Weights are stored transposed ((fan_in, fan_out)), zero-padded so every
    lane dim is a multiple of 128, and cast ONCE to compute_dtype (bf16 is a
    valid fast path on v5e/v6e/v7x; accumulation stays f32 in-kernel).
    Biases are stacked into one (3, max_pad) f32 array.
    """
    ks = jax.random.split(key, 6)
    dh_p = _round_up(d_hidden, LANE)
    do_p = _round_up(d_out, LANE)
    bmax = max(dh_p, do_p)

    def linear(kw, kb, fan_in, fan_out, fan_in_pad, fan_out_pad):
        bound = 1.0 / jnp.sqrt(jnp.float32(fan_in))
        w = jax.random.uniform(kw, (fan_in, fan_out), jnp.float32, -bound, bound)
        bv = jax.random.uniform(kb, (fan_out,), jnp.float32, -bound, bound)
        w_p = jnp.zeros((fan_in_pad, fan_out_pad), jnp.float32)
        w_p = w_p.at[:fan_in, :fan_out].set(w).astype(compute_dtype)
        b_p = jnp.zeros((bmax,), jnp.float32).at[:fan_out].set(bv)
        return w_p, b_p

    w1, b1 = linear(ks[0], ks[1], d_in, d_hidden, d_in, dh_p)
    w2, b2 = linear(ks[2], ks[3], d_hidden, d_hidden, dh_p, dh_p)
    w3, b3 = linear(ks[4], ks[5], d_hidden, d_out, dh_p, do_p)
    b = jnp.stack([b1, b2, b3], axis=0)  # (3, bmax), f32
    return (w1, w2, w3, b)


if __name__ == "__main__":
    key = jax.random.PRNGKey(0)
    kx, kp = jax.random.split(key)

    batch, d_in, d_hidden, d_out = 8, 32, 100, 16
    x = jax.random.normal(kx, (batch, d_in), jnp.float32)
    # f32 compute for exact parity with the reference; pass jnp.bfloat16 to
    # init_params for the fast MXU path (then relax the tolerance).
    params = init_params(kp, d_in, d_hidden, d_out, compute_dtype=jnp.float32)

    out = jax.block_until_ready(mlp_forward(x, params, d_out))

    # Pure-JAX reference with the same padded operands (same math as the
    # PyTorch module; padded lanes are exactly zero), sliced back to d_out.
    w1, w2, w3, b = params
    dh_p, do_p = w1.shape[1], w3.shape[1]

    def ref_fn(xin):
        r = jnp.maximum(xin @ w1 + b[0, :dh_p], 0.0)
        r = jnp.maximum(r @ w2 + b[1, :dh_p], 0.0)
        return (r @ w3 + b[2, :do_p])[:, :d_out]

    assert out.shape == (batch, d_out)
    assert jnp.allclose(out, ref_fn(x), atol=1e-5, rtol=1e-5)

    # Also exercise the batch-tiled (grid) path with weights held resident.
    x2 = jax.random.normal(kx, (512, d_in), jnp.float32)
    out2 = jax.block_until_ready(mlp_forward(x2, params, d_out, block_b=256))
    assert out2.shape == (512, d_out)
    assert jnp.allclose(out2, ref_fn(x2), atol=1e-5, rtol=1e-5)

    print("KERNEL_OK")
</pallas_src>

<mosaic_0001>
module attributes {stable_mosaic.version = 11 : i64} {
  func.func @mlp_kernel(%arg0: memref<8x32xf32, #tpu.memory_space<vmem>>, %arg1: memref<32x128xf32, #tpu.memory_space<vmem>>, %arg2: memref<128x128xf32, #tpu.memory_space<vmem>>, %arg3: memref<128x128xf32, #tpu.memory_space<vmem>>, %arg4: memref<3x128xf32, #tpu.memory_space<vmem>>, %arg5: memref<8x128xf32, #tpu.memory_space<vmem>>) attributes {dimension_semantics = [], scalar_prefetch = 0 : i64, scratch_operands = 0 : i64, tpu.core_type = #tpu.core_type<tc>} {
    %c0 = arith.constant 0 : index
    %c0_0 = arith.constant 0 : index
    %0 = vector.load %arg0[%c0, %c0_0] : memref<8x32xf32, #tpu.memory_space<vmem>>, vector<8x32xf32>
    %c0_1 = arith.constant 0 : index
    %c0_2 = arith.constant 0 : index
    %1 = vector.load %arg1[%c0_1, %c0_2] : memref<32x128xf32, #tpu.memory_space<vmem>>, vector<32x128xf32>
    %cst = arith.constant dense<0.000000e+00> : vector<8x128xf32>
    %2 = tpu.matmul %0, %1, %cst {dimension_numbers = #tpu.dot_dimension_numbers<[1], [0], [0], [1], [0, 0, 1, 1], [], []>} : vector<8x32xf32>, vector<32x128xf32>, vector<8x128xf32> -> vector<8x128xf32>
    %c0_3 = arith.constant 0 : index
    %c0_4 = arith.constant 0 : index
    %3 = vector.load %arg4[%c0_3, %c0_4] : memref<3x128xf32, #tpu.memory_space<vmem>>, vector<1x128xf32>
    %4 = vector.broadcast %3 : vector<1x128xf32> to vector<8x128xf32>
    %5 = arith.addf %2, %4 : vector<8x128xf32>
    %cst_5 = arith.constant 0.000000e+00 : f32
    %6 = vector.broadcast %cst_5 : f32 to vector<8x128xf32>
    %7 = arith.maximumf %5, %6 : vector<8x128xf32>
    %c0_6 = arith.constant 0 : index
    %c0_7 = arith.constant 0 : index
    %8 = vector.load %arg2[%c0_6, %c0_7] : memref<128x128xf32, #tpu.memory_space<vmem>>, vector<128x128xf32>
    %cst_8 = arith.constant dense<0.000000e+00> : vector<8x128xf32>
    %9 = tpu.matmul %7, %8, %cst_8 {dimension_numbers = #tpu.dot_dimension_numbers<[1], [0], [0], [1], [0, 0, 1, 1], [], []>} : vector<8x128xf32>, vector<128x128xf32>, vector<8x128xf32> -> vector<8x128xf32>
    %c1 = arith.constant 1 : index
    %c0_9 = arith.constant 0 : index
    %10 = vector.load %arg4[%c1, %c0_9] : memref<3x128xf32, #tpu.memory_space<vmem>>, vector<1x128xf32>
    %11 = vector.broadcast %10 : vector<1x128xf32> to vector<8x128xf32>
    %12 = arith.addf %9, %11 : vector<8x128xf32>
    %cst_10 = arith.constant 0.000000e+00 : f32
    %13 = vector.broadcast %cst_10 : f32 to vector<8x128xf32>
    %14 = arith.maximumf %12, %13 : vector<8x128xf32>
    %c0_11 = arith.constant 0 : index
    %c0_12 = arith.constant 0 : index
    %15 = vector.load %arg3[%c0_11, %c0_12] : memref<128x128xf32, #tpu.memory_space<vmem>>, vector<128x128xf32>
    %cst_13 = arith.constant dense<0.000000e+00> : vector<8x128xf32>
    %16 = tpu.matmul %14, %15, %cst_13 {dimension_numbers = #tpu.dot_dimension_numbers<[1], [0], [0], [1], [0, 0, 1, 1], [], []>} : vector<8x128xf32>, vector<128x128xf32>, vector<8x128xf32> -> vector<8x128xf32>
    %c2 = arith.constant 2 : index
    %c0_14 = arith.constant 0 : index
    %17 = vector.load %arg4[%c2, %c0_14] : memref<3x128xf32, #tpu.memory_space<vmem>>, vector<1x128xf32>
    %18 = vector.broadcast %17 : vector<1x128xf32> to vector<8x128xf32>
    %19 = arith.addf %16, %18 : vector<8x128xf32>
    %c0_15 = arith.constant 0 : index
    %c0_16 = arith.constant 0 : index
    %20 = vector.load %arg5[%c0_15, %c0_16] : memref<8x128xf32, #tpu.memory_space<vmem>>, vector<8x128xf32>
    tpu.vector_store %arg5[%c0_15, %c0_16], %19 {strides = array<i32>} : memref<8x128xf32, #tpu.memory_space<vmem>>, vector<8x128xf32>,
    return
  }
}

</mosaic_0001>

<bundles_post_ra>
// kernel: tpu_custom_call.1
= control target key start
LH: loop header
LB: loop body
LE: loop exit
PB: predicated region body
PF: predicated region fallthrough
CT: control target
= control target key end

     0   :  { %10 = vsyncpa [#allocation3], 0  ;;  %s715_s0 = inlined_call_operand.hbm [shape: f32[8,32], index: 0, kind: input, shape index: {}]   ;;  %s716_s1 = inlined_call_operand.hbm [shape: f32[32,128], index: 1, kind: input, shape index: {}]   ;;  %s717_s2 = inlined_call_operand.hbm [shape: f32[128,128], index: 2, kind: input, shape index: {}]   ;;  %s718_s3 = inlined_call_operand.hbm [shape: f32[128,128], index: 3, kind: input, shape index: {}]   ;;  %s719_s4 = inlined_call_operand.vmem [shape: f32[3,128], index: 4, kind: input, shape index: {}]   ;;  %s720_s5 = inlined_call_operand.hbm [shape: f32[8,128], index: 5, kind: output, shape index: {}]  }
   0x1   :  { %11 = vsyncpa [#allocation6], 0 }
   0x2   :  { %12 = vsyncpa [#allocation9], 0 }
   0x3   :  { %13 = vsyncpa [#allocation4], 0  ;;  %s601_s18 = smov [#allocation5]  }
   0x4   :  { %s29_s19 = sshll.u32 %s601_s18, 4  ;;  %s30_s19 = int_to_ptr.vmem [resolvable:$true] %s29_s19 }
   0x5   :  { %s501_s20 = scalar_lea.vmem %s30_s19, 512  ;;  %p506_p1 = scmp.lt.s32.totalorder %s30_s19, %s30_s19 }
   0x6   :  { %p502_p0 = scmp.ne.s32.totalorder %s30_s19, %s501_s20  ;;  %p507_p2 = scmp.lt.s32.totalorder %s501_s20, %s501_s20 }
   0x8   :  { %p508_p3 = por %p507_p2, %p506_p1 }
   0xa   :  { %p509_p4 = pnand %p508_p3, %p502_p0 }
   0xc   :  { %512 = shalt.err (!%p509_p4)
}
   0xd   :  { %s602_s21 = smov 128   ;;  %s603_s22 = smov 8  }
   0xe   :  { %35 = dma.hbm_to_vmem [thread:$0]  %s716_s1, 512, %s30_s19, [#allocation6], %s602_s21, %s602_s21, %s603_s22  }
   0xf   :  { %s604_s25 = smov [#allocation2]   ;;  %s605_s27 = smov [#allocation7]  }
  0x10   :  { %s20_s26 = sshll.u32 %s604_s25, 4  ;;  %s41_s28 = sshll.u32 %s605_s27, 4  ;;  %s21_s26 = int_to_ptr.vmem [resolvable:$true] %s20_s26  ;;  %s42_s28 = int_to_ptr.vmem [resolvable:$true] %s41_s28 }
  0x11   :  { %s521_s29 = scalar_lea.vmem %s21_s26, 128  ;;  %p526_p6 = scmp.lt.s32.totalorder %s21_s26, %s21_s26 }
  0x12   :  { %p522_p5 = scmp.ne.s32.totalorder %s21_s26, %s521_s29  ;;  %p527_p7 = scmp.lt.s32.totalorder %s521_s29, %s521_s29 }
  0x14   :  { %p528_p8 = por %p527_p7, %p526_p6 }
  0x16   :  { %p529_p9 = pnand %p528_p8, %p522_p5 }
  0x18   :  { %532 = shalt.err (!%p529_p9)
}
  0x19   :  { %23 = dma.hbm_to_vmem [thread:$0]  %s715_s0, 128, %s21_s26, [#allocation3]  }
  0x1a   :  { %s541_s7 = scalar_lea.vmem %s42_s28, 2048  ;;  %p546_p11 = scmp.lt.s32.totalorder %s42_s28, %s42_s28 }
  0x1b   :  { %p542_p10 = scmp.ne.s32.totalorder %s42_s28, %s541_s7  ;;  %p547_p12 = scmp.lt.s32.totalorder %s541_s7, %s541_s7 }
  0x1d   :  { %p548_p13 = por %p547_p12, %p546_p11 }
  0x1f   :  { %p549_p0 = pnand %p548_p13, %p542_p10 }
  0x21   :  { %552 = shalt.err (!%p549_p0)
}
  0x22   :  { %47 = dma.hbm_to_vmem [thread:$0]  %s717_s2, 2048, %s42_s28, [#allocation6], %s602_s21, %s602_s21, %s603_s22  }
  0x23   :  { %s606_s9 = smov [#allocation8]  }
  0x24   :  { %s53_s10 = sshll.u32 %s606_s9, 4  ;;  %s54_s10 = int_to_ptr.vmem [resolvable:$true] %s53_s10 }
  0x25   :  { %s561_s11 = scalar_lea.vmem %s54_s10, 2048  ;;  %p566_p2 = scmp.lt.s32.totalorder %s54_s10, %s54_s10 }
  0x26   :  { %p562_p1 = scmp.ne.s32.totalorder %s54_s10, %s561_s11  ;;  %p567_p3 = scmp.lt.s32.totalorder %s561_s11, %s561_s11 }
  0x28   :  { %p568_p4 = por %p567_p3, %p566_p2 }
  0x2a   :  { %p569_p5 = pnand %p568_p4, %p562_p1 }
  0x2c   :  { %572 = shalt.err (!%p569_p5)
}
  0x2d   :  { %59 = dma.hbm_to_vmem [thread:$0]  %s718_s3, 2048, %s54_s10, [#allocation9], %s602_s21, %s602_s21, %s603_s22  }
  0x2e   :  { %593 = dma.done.wait [#allocation3], 128  }
  0x2f   :  { %594 = vsyncadd [#allocation3], 4294967168 }
  0x30   :  { %595 = dma.done.wait [#allocation6], 2560  }
  0x31   :  { %596 = vsyncadd [#allocation6], 4294964736 }
  0x32   :  { %597 = dma.done.wait [#allocation9], 2048  }
  0x33   :  { %598 = vsyncadd [#allocation9], 4294965248  ;;  %v607_v0 = vmov 0.0   ;;  %vm608_vm0 = vmmov 0   ;;  %v78_v1 = vld [vmem:[#allocation5 + $0x18] sm:$0xff]  ;;  %v77_v2 = vld [vmem:[#allocation5 + $0x10] sm:$0xff] }
  0x34   :  { %403 = vmatprep.subr.mxu0 %v607_v0  ;;  %411 = vmatprep.mubr.msk.f32.mxu0 %vm608_vm0, %v607_v0  ;;  %v174_v3 = vld [vmem:[#allocation7 + $0x78] sm:$0xff]  ;;  %v76_v4 = vld [vmem:[#allocation5 + $0x8] sm:$0xff]  ;;  %v173_v5 = vld [vmem:[#allocation7 + $0x70] sm:$0xff]  ;;  %vm84_vm1 = vcmask 261120   ;;  %s609_s17 = smov [#allocation10]  }
  0x35   :  { %414 = vmatprep.subr.mxu1 %v607_v0  ;;  %446 = vmatprep.mubr.msk.f32.mxu1 %vm608_vm0, %v607_v0  ;;  %v172_v6 = vld [vmem:[#allocation7 + $0x68] sm:$0xff]  ;;  %v75_v7 = vld [vmem:[#allocation5] sm:$0xff]  ;;  %v74_v8 = vld [vmem:[#allocation2] sm:$0xff]  ;;  %s349_s18 = sshll.u32 %s609_s17, 4  ;;  %s350_s18 = int_to_ptr.vmem [resolvable:$true] %s349_s18 }
  0x36   :  { %404 = vmatpush3.msra.mxu0 %v78_v1  ;;  %415 = vmatpush3.msra.mxu1 %v174_v3  ;;  %v171_v9 = vld [vmem:[#allocation7 + $0x60] sm:$0xff]  ;;  %v170_v10 = vld [vmem:[#allocation7 + $0x58] sm:$0xff]  ;;  %v169_v11 = vld [vmem:[#allocation7 + $0x50] sm:$0xff]  ;;  %s573_s19 = scalar_lea.vmem %s350_s18, 128  ;;  %p578_p7 = scmp.lt.s32.totalorder %s350_s18, %s350_s18 }
  0x37   :  { %405 = vmatprep.subr.mxu0 %v607_v0  ;;  %416 = vmatprep.subr.mxu1 %v607_v0  ;;  %v168_v12 = vld [vmem:[#allocation7 + $0x48] sm:$0xff]  ;;  %v167_v13 = vld [vmem:[#allocation7 + $0x40] sm:$0xff]  ;;  %v166_v14 = vld [vmem:[#allocation7 + $0x38] sm:$0xff]  ;;  %p574_p6 = scmp.ne.s32.totalorder %s350_s18, %s573_s19  ;;  %p579_p8 = scmp.lt.s32.totalorder %s573_s19, %s573_s19 }
  0x38   :  { %406 = vmatpush3.msra.mxu0 %v77_v2  ;;  %417 = vmatpush3.msra.mxu1 %v173_v5  ;;  %v165_v15 = vld [vmem:[#allocation7 + $0x30] sm:$0xff]  ;;  %v164_v16 = vld [vmem:[#allocation7 + $0x28] sm:$0xff]  ;;  %v163_v17 = vld [vmem:[#allocation7 + $0x20] sm:$0xff] }
  0x39   :  { %407 = vmatprep.subr.mxu0 %v607_v0  ;;  %418 = vmatprep.subr.mxu1 %v607_v0  ;;  %v162_v18 = vld [vmem:[#allocation7 + $0x18] sm:$0xff]  ;;  %v161_v19 = vld [vmem:[#allocation7 + $0x10] sm:$0xff]  ;;  %v160_v20 = vld [vmem:[#allocation7 + $0x8] sm:$0xff]  ;;  %p580_p9 = por %p579_p8, %p578_p7 }
  0x3a   :  { %408 = vmatpush3.msra.mxu0 %v76_v4  ;;  %419 = vmatpush3.msra.mxu1 %v172_v6  ;;  %v159_v21 = vld [vmem:[#allocation7] sm:$0xff]  ;;  %v266_v22 = vld [vmem:[#allocation8 + $0x78] sm:$0xff]  ;;  %v265_v23 = vld [vmem:[#allocation8 + $0x70] sm:$0xff] }
  0x3b   :  { %409 = vmatprep.subr.mxu0 %v607_v0  ;;  %420 = vmatprep.subr.mxu1 %v607_v0  ;;  %v264_v24 = vld [vmem:[#allocation8 + $0x68] sm:$0xff]  ;;  %v263_v25 = vld [vmem:[#allocation8 + $0x60] sm:$0xff]  ;;  %v262_v26 = vld [vmem:[#allocation8 + $0x58] sm:$0xff]  ;;  %p581_p10 = pnand %p580_p9, %p574_p6 }
  0x3c   :  { %410 = vmatpush3.msra.mxu0 %v75_v7  ;;  %421 = vmatpush3.msra.mxu1 %v171_v9  ;;  %v261_v27 = vld [vmem:[#allocation8 + $0x50] sm:$0xff]  ;;  %v260_v28 = vld [vmem:[#allocation8 + $0x48] sm:$0xff]  ;;  %v259_v29 = vld [vmem:[#allocation8 + $0x40] sm:$0xff] }
  0x3d   :  { %412 = vmatmul.mubr.msk.f32.vlgmr.msra.gmra.mxu0 %vm84_vm1, %v74_v8  ;;  %422 = vmatprep.subr.mxu1 %v607_v0  ;;  %v258_v30 = vld [vmem:[#allocation8 + $0x38] sm:$0xff]  ;;  %v257_v31 = vld [vmem:[#allocation8 + $0x30] sm:$0xff]  ;;  %v256_v32 = vld [vmem:[#allocation8 + $0x28] sm:$0xff] }
  0x3e   :  { %449 = vmatprep.subr.mxu0 %v607_v0  ;;  %423 = vmatpush3.msra.mxu1 %v170_v10  ;;  %v255_v33 = vld [vmem:[#allocation8 + $0x20] sm:$0xff]  ;;  %v254_v34 = vld [vmem:[#allocation8 + $0x18] sm:$0xff]  ;;  %v253_v40 = vld [vmem:[#allocation8 + $0x10] sm:$0xff] }
  0x3f   :  { %481 = vmatprep.mubr.msk.f32.mxu0 %vm608_vm0, %v607_v0  ;;  %424 = vmatprep.subr.mxu1 %v607_v0  ;;  %v360_v35 = vld [vmem:[%s719_s4] ss:$0 sm:$0xff]  ;;  %v252_v41 = vld [vmem:[#allocation8 + $0x8] sm:$0xff]  ;;  %v251_v42 = vld [vmem:[#allocation8] sm:$0xff] }
  0x40   :  { %425 = vmatpush3.msra.mxu1 %v169_v11  ;;  %450 = vmatpush3.msra.mxu0 %v266_v22  ;;  %v362_v43 = vld [vmem:[%s719_s4 + $0x1] ss:$0 sm:$0xff]  ;;  %v363_v48 = vld [vmem:[%s719_s4 + $0x2] ss:$0 sm:$0xff] }
  0x41   :  { %426 = vmatprep.subr.mxu1 %v607_v0  ;;  %451 = vmatprep.subr.mxu0 %v607_v0 }
  0x42   :  { %427 = vmatpush3.msra.mxu1 %v168_v12  ;;  %452 = vmatpush3.msra.mxu0 %v265_v23 }
  0x43   :  { %428 = vmatprep.subr.mxu1 %v607_v0  ;;  %453 = vmatprep.subr.mxu0 %v607_v0 }
  0x44   :  { %429 = vmatpush3.msra.mxu1 %v167_v13  ;;  %454 = vmatpush3.msra.mxu0 %v264_v24 }
  0x45   :  { %430 = vmatprep.subr.mxu1 %v607_v0  ;;  %455 = vmatprep.subr.mxu0 %v607_v0 }
  0x46   :  { %431 = vmatpush3.msra.mxu1 %v166_v14  ;;  %456 = vmatpush3.msra.mxu0 %v263_v25 }
  0x47   :  { %432 = vmatprep.subr.mxu1 %v607_v0  ;;  %457 = vmatprep.subr.mxu0 %v607_v0 }
  0x48   :  { %433 = vmatpush3.msra.mxu1 %v165_v15  ;;  %458 = vmatpush3.msra.mxu0 %v262_v26 }
  0x49   :  { %434 = vmatprep.subr.mxu1 %v607_v0  ;;  %459 = vmatprep.subr.mxu0 %v607_v0 }
  0x4a   :  { %435 = vmatpush3.msra.mxu1 %v164_v16  ;;  %460 = vmatpush3.msra.mxu0 %v261_v27 }
  0x4b   :  { %436 = vmatprep.subr.mxu1 %v607_v0  ;;  %461 = vmatprep.subr.mxu0 %v607_v0 }
  0x4c   :  { %437 = vmatpush3.msra.mxu1 %v163_v17  ;;  %462 = vmatpush3.msra.mxu0 %v260_v28 }
  0x4d   :  { %438 = vmatprep.subr.mxu1 %v607_v0  ;;  %463 = vmatprep.subr.mxu0 %v607_v0 }
  0x4e   :  { %439 = vmatpush3.msra.mxu1 %v162_v18  ;;  %464 = vmatpush3.msra.mxu0 %v259_v29 }
  0x4f   :  { %440 = vmatprep.subr.mxu1 %v607_v0  ;;  %465 = vmatprep.subr.mxu0 %v607_v0 }
  0x50   :  { %441 = vmatpush3.msra.mxu1 %v161_v19  ;;  %466 = vmatpush3.msra.mxu0 %v258_v30 }
  0x51   :  { %442 = vmatprep.subr.mxu1 %v607_v0  ;;  %467 = vmatprep.subr.mxu0 %v607_v0 }
  0x52   :  { %443 = vmatpush3.msra.mxu1 %v160_v20  ;;  %468 = vmatpush3.msra.mxu0 %v257_v31 }
  0x53   :  { %444 = vmatprep.subr.mxu1 %v607_v0  ;;  %469 = vmatprep.subr.mxu0 %v607_v0 }
  0x54   :  { %445 = vmatpush3.msra.mxu1 %v159_v21  ;;  %470 = vmatpush3.msra.mxu0 %v256_v32 }
  0x55   :  { %471 = vmatprep.subr.mxu0 %v607_v0 }
  0x56   :  { %472 = vmatpush3.msra.mxu0 %v255_v33 }
  0x57   :  { %473 = vmatprep.subr.mxu0 %v607_v0 }
  0x58   :  { %474 = vmatpush3.msra.mxu0 %v254_v34 }
  0x59   :  { %475 = vmatprep.subr.mxu0 %v607_v0 }
  0x5a   :  { %476 = vmatpush3.msra.mxu0 %v253_v40 }
  0x5b   :  { %477 = vmatprep.subr.mxu0 %v607_v0 }
  0x5c   :  { %478 = vmatpush3.msra.mxu0 %v252_v41 }
  0x5d   :  { %479 = vmatprep.subr.mxu0 %v607_v0 }
  0x5e   :  { %480 = vmatpush3.msra.mxu0 %v251_v42 }
  0xfd   :  { %v154_v36 = vpop.f32.mrf.mxu0 }
  0xfe   :  { %v155_v37 = vadd.f32 %v360_v35, %v154_v36 }
  0xff   :  { %v413_v38 = vpop.f32.mrf.mxu0 }
 0x100   :  { %v158_v39 = vmax.f32 %v155_v37, 0.0 }
 0x102   :  { %447 = vmatmul.mubr.f32.vlgmr.msra.gmra.mxu1 %v158_v39 }
 0x1c2   :  { %v246_v44 = vpop.f32.mrf.mxu1 }
 0x1c3   :  { %v247_v45 = vadd.f32 %v362_v43, %v246_v44 }
 0x1c4   :  { %v448_v46 = vpop.f32.mrf.mxu1 }
 0x1c5   :  { %v250_v47 = vmax.f32 %v247_v45, 0.0 }
 0x1c7   :  { %482 = vmatmul.mubr.f32.vlgmr.msra.gmra.mxu0 %v250_v47 }
 0x287   :  { %v338_v49 = vpop.f32.mrf.mxu0 }
 0x288   :  { %v339_v50 = vadd.f32 %v363_v48, %v338_v49 }
 0x289   :  { %v483_v51 = vpop.f32.mrf.mxu0 }
 0x28a   :  { %342 = vst [vmem:[#allocation10] sm:$0xff] %v339_v50 }
 0x28b   :  { %584 = shalt.err (!%p581_p10)
}
 0x28c   :  { %352 = dma.vmem_to_hbm [thread:$0]  %s350_s18, 128, %s720_s5, [#allocation4]  }
 0x28d   :  { %599 = dma.done.wait [#allocation4], 128  }
 0x28e   :  { %600 = vsyncadd [#allocation4], 4294967168 }
 0x28f   :  { %356 = vsyncpa [#allocation3], 1 }
 0x290   :  { %357 = vsyncpa [#allocation6], 1 }
 0x291   :  { %358 = vsyncpa [#allocation9], 1 }
 0x292   :  { %359 = vsyncpa [#allocation4], 1 }

</bundles_post_ra>
